<compile_context>
chip_gen: v5e
topology: v5e:2x2
jax: 0.10.0
libtpu: 0.0.40
codegen_flags: <defaults>
</compile_context>

<pallas_src>
import jax
import jax.numpy as jnp
from jax.experimental import pallas as pl
from jax.experimental.pallas import tpu as pltpu

LANE = 128
SUBLANE = 8
NEG_BIG = -1e30  # padded class-bias value: exp underflows to exactly 0


def _round_up(n, m):
    return ((n + m - 1) // m) * m


def mlp_softmax_kernel(x_ref, w_ref, b_ref, o_ref):
    # Single folded affine layer: x cast to bf16 in-kernel (MXU operands),
    # f32 MXU accumulation, f32 bias add.
    logits = jnp.dot(x_ref[...].astype(w_ref.dtype), w_ref[...],
                     preferred_element_type=jnp.float32) + b_ref[...]
    # Numerically stable row-wise softmax in f32 over the 128-lane tile.
    # Padded class lanes carry a -1e30 bias -> exp() is exactly 0, so the
    # denominator over 128 lanes equals the denominator over the real classes.
    m = jnp.max(logits, axis=-1, keepdims=True)
    e = jnp.exp(logits - m)
    denom = jnp.sum(e, axis=-1, keepdims=True)
    # Exact division (NOT approx reciprocal) so each row sums to 1 within eps.
    probs = e / denom
    # Write only the real class lanes (narrow store; output traffic ~40B/row).
    o_ref[...] = probs[:, :o_ref.shape[-1]].astype(o_ref.dtype)


def fold_and_pad_params(params, num_layers=3):
    """One-time parameter preprocessing (hoisted out of the per-call path).

    Folds the activation-free chain of Linears into a single affine map:
        W_eff = w0 @ w1 @ ... @ wk
        b_eff = (...((b0 @ w1 + b1) @ w2 + b2)...)
    composed in f32 (exact up to f32 rounding).  The class dim is padded to a
    lane-dense 128: padded W columns are 0, padded bias lanes are -1e30.
    Weights are stored bf16 (MXU-native); bias stays f32.
    """
    ws = [params[f"w{i}"] for i in range(num_layers)]
    bs = [params[f"b{i}"] for i in range(num_layers)]
    w_eff, b_eff = ws[0], bs[0]
    for w, b in zip(ws[1:], bs[1:]):
        b_eff = b_eff @ w + b
        w_eff = w_eff @ w
    out_size = w_eff.shape[1]
    outp = _round_up(out_size, LANE)
    w_p = jnp.pad(w_eff, ((0, 0), (0, outp - out_size))).astype(jnp.bfloat16)
    b_p = jnp.pad(b_eff, ((0, 0), (0, outp - out_size)),
                  constant_values=NEG_BIG).astype(jnp.float32)
    return w_p, b_p, out_size


def mlp_forward(x, folded, *, tb=256):
    """x: (B, IN) float32, fed un-padded and un-cast; folded: fold_and_pad_params()."""
    w_p, b_p, out_size = folded
    B, IN = x.shape
    OUTp = w_p.shape[1]

    # Batch tile: multiple of 8 sublanes, capped at `tb`; when B allows, pick
    # a tile that yields >= 2 grid steps so v7x's two TensorCores and the
    # BlockSpec double-buffer pipeline actually engage.  (sweep tb upward for
    # large B on v6e/v7x; the folded kernel keeps vreg pressure low on v5e.)
    if B <= SUBLANE:
        tb_eff = B                                    # full-dim block (legal)
    else:
        tb_eff = min(tb, max(SUBLANE, _round_up(pl.cdiv(B, 2), SUBLANE)))
    grid = (pl.cdiv(B, tb_eff),)
    # Partial last block: x rows past B are unspecified and the corresponding
    # output rows are out-of-bounds writes (dropped) — safe because softmax is
    # row-independent.

    flops = 2 * B * IN * OUTp
    bytes_accessed = (B * IN * 4            # x stream (f32, read once)
                      + w_p.size * 2        # resident bf16 weights
                      + b_p.size * 4        # resident f32 bias
                      + B * out_size * 4)   # (B, 10) f32 output
    cost = pl.CostEstimate(flops=flops, transcendentals=B * OUTp,
                           bytes_accessed=bytes_accessed)

    return pl.pallas_call(
        mlp_softmax_kernel,
        out_shape=jax.ShapeDtypeStruct((B, out_size), jnp.float32),
        grid=grid,
        in_specs=[
            pl.BlockSpec((tb_eff, IN), lambda i: (i, 0)),   # batch-tiled x
            pl.BlockSpec(w_p.shape, lambda i: (0, 0)),      # VMEM-resident W
            pl.BlockSpec(b_p.shape, lambda i: (0, 0)),      # VMEM-resident b
        ],
        out_specs=pl.BlockSpec((tb_eff, out_size), lambda i: (i, 0)),
        compiler_params=pltpu.CompilerParams(
            dimension_semantics=("parallel",)),
        cost_estimate=cost,
    )(x, w_p, b_p)


def init_params(key, input_size, hidden_layers, output_size):
    """Deterministic init matching the module's layer shapes (2 hidden layers).

    Mirrors the PyTorch constructor:
      Linear(input_size, h0), Linear(h0, h1), Linear(h1, output_size)
    Weights stored as (in, out) (transpose of nn.Linear's (out, in)).
    """
    h0, h1 = hidden_layers
    dims = [(input_size, h0), (h0, h1), (h1, output_size)]
    params = {}
    for i, (fan_in, fan_out) in enumerate(dims):
        key, kw, kb = jax.random.split(key, 3)
        bound = 1.0 / jnp.sqrt(fan_in)
        params[f"w{i}"] = jax.random.uniform(
            kw, (fan_in, fan_out), jnp.float32, -bound, bound)
        params[f"b{i}"] = jax.random.uniform(
            kb, (1, fan_out), jnp.float32, -bound, bound)
    return params


if __name__ == "__main__":
    # MNIST-like: 28*28 flattened inputs, 10 classes; small batch & hiddens.
    input_size = 28 * 28          # 784
    hidden_layers = [32, 32]
    output_size = 10
    batch = 8

    key = jax.random.PRNGKey(0)
    key, kx = jax.random.split(key)
    x = jax.random.normal(kx, (batch, input_size), jnp.float32)
    params = init_params(key, input_size, hidden_layers, output_size)

    # One-time preprocessing (fold + pad + bf16 cast), hoisted out of the
    # per-call path; only x-dependent work runs inside mlp_forward.
    folded = fold_and_pad_params(params)

    out = jax.block_until_ready(mlp_forward(x, folded))

    # Reference with the exact module semantics: three f32 affine layers (no
    # inter-layer activation) followed by softmax over dim 1.
    h = x @ params["w0"] + params["b0"]
    h = h @ params["w1"] + params["b1"]
    logits = h @ params["w2"] + params["b2"]
    ref = jax.nn.softmax(logits, axis=1)

    assert out.shape == (batch, output_size)
    # bf16 operands / f32 accumulation vs pure-f32 reference: prob error is a
    # few 1e-4 at these scales, well inside 2e-3.
    assert jnp.allclose(out, ref, atol=2e-3, rtol=2e-3)
    # Exact division in the kernel -> rows sum to 1 within f32 rounding.
    assert jnp.allclose(jnp.sum(out, axis=1), 1.0, atol=1e-3)

    print("KERNEL_OK")
</pallas_src>

<mosaic_0001>
module attributes {stable_mosaic.version = 11 : i64} {
  func.func @mlp_softmax_kernel(%arg0: i32, %arg1: memref<8x784xf32, #tpu.memory_space<vmem>>, %arg2: memref<784x128xbf16, #tpu.memory_space<vmem>>, %arg3: memref<1x128xf32, #tpu.memory_space<vmem>>, %arg4: memref<8x10xf32, #tpu.memory_space<vmem>>) attributes {dimension_semantics = [#tpu.dimension_semantics<parallel>], iteration_bounds = array<i64: 1>, scalar_prefetch = 0 : i64, scratch_operands = 0 : i64, tpu.core_type = #tpu.core_type<tc>, window_params = [{transform_indices = @transform_0, window_bounds = array<i64: 8, 784>}, {pipeline_mode = #tpu.pipeline_mode<synchronous>, transform_indices = @transform_1, window_bounds = array<i64: 784, 128>}, {pipeline_mode = #tpu.pipeline_mode<synchronous>, transform_indices = @transform_2, window_bounds = array<i64: 1, 128>}, {transform_indices = @transform_3, window_bounds = array<i64: 8, 10>}]} {
    %c0 = arith.constant 0 : index
    %c0_0 = arith.constant 0 : index
    %0 = vector.load %arg1[%c0, %c0_0] : memref<8x784xf32, #tpu.memory_space<vmem>>, vector<8x784xf32>
    %1 = arith.truncf %0 : vector<8x784xf32> to vector<8x784xbf16>
    %c0_1 = arith.constant 0 : index
    %c0_2 = arith.constant 0 : index
    %2 = vector.load %arg2[%c0_1, %c0_2] : memref<784x128xbf16, #tpu.memory_space<vmem>>, vector<784x128xbf16>
    %cst = arith.constant dense<0.000000e+00> : vector<8x128xf32>
    %3 = tpu.matmul %1, %2, %cst {dimension_numbers = #tpu.dot_dimension_numbers<[1], [0], [0], [1], [0, 0, 1, 1], [], []>} : vector<8x784xbf16>, vector<784x128xbf16>, vector<8x128xf32> -> vector<8x128xf32>
    %c0_3 = arith.constant 0 : index
    %c0_4 = arith.constant 0 : index
    %4 = vector.load %arg3[%c0_3, %c0_4] : memref<1x128xf32, #tpu.memory_space<vmem>>, vector<1x128xf32>
    %5 = vector.broadcast %4 : vector<1x128xf32> to vector<8x128xf32>
    %6 = arith.addf %3, %5 : vector<8x128xf32>
    %cst_5 = arith.constant dense<0xFF800000> : vector<8xf32>
    %7 = vector.multi_reduction <maximumf>, %6, %cst_5 [1] : vector<8x128xf32> to vector<8xf32>
    %8 = vector.shape_cast %7 : vector<8xf32> to vector<8x1xf32>
    %9 = vector.broadcast %8 : vector<8x1xf32> to vector<8x128xf32>
    %10 = arith.subf %6, %9 : vector<8x128xf32>
    %11 = math.exp %10 : vector<8x128xf32>
    %cst_6 = arith.constant dense<0.000000e+00> : vector<8xf32>
    %12 = vector.multi_reduction <add>, %11, %cst_6 [1] : vector<8x128xf32> to vector<8xf32>
    %13 = vector.shape_cast %12 : vector<8xf32> to vector<8x1xf32>
    %14 = vector.broadcast %13 : vector<8x1xf32> to vector<8x128xf32>
    %15 = arith.divf %11, %14 : vector<8x128xf32>
    %16 = vector.extract_strided_slice %15 {offsets = [0, 0], sizes = [8, 10], strides = [1, 1]} : vector<8x128xf32> to vector<8x10xf32>
    %c0_7 = arith.constant 0 : index
    %c0_8 = arith.constant 0 : index
    %17 = vector.load %arg4[%c0_7, %c0_8] : memref<8x10xf32, #tpu.memory_space<vmem>>, vector<8x10xf32>
    tpu.vector_store %arg4[%c0_7, %c0_8], %16 {strides = array<i32>} : memref<8x10xf32, #tpu.memory_space<vmem>>, vector<8x10xf32>,
    return
  }
  func.func @transform_0(%arg0: i32) -> (i32, i32) {
    %c0_i32 = arith.constant 0 : i32
    %c0_i32_0 = arith.constant 0 : i32
    return %arg0, %c0_i32 : i32, i32
  }
  func.func @transform_1(%arg0: i32) -> (i32, i32) {
    %c0_i32 = arith.constant 0 : i32
    %c0_i32_0 = arith.constant 0 : i32
    %c0_i32_1 = arith.constant 0 : i32
    return %c0_i32, %c0_i32_0 : i32, i32
  }
  func.func @transform_2(%arg0: i32) -> (i32, i32) {
    %c0_i32 = arith.constant 0 : i32
    %c0_i32_0 = arith.constant 0 : i32
    %c0_i32_1 = arith.constant 0 : i32
    return %c0_i32, %c0_i32_0 : i32, i32
  }
  func.func @transform_3(%arg0: i32) -> (i32, i32) {
    %c0_i32 = arith.constant 0 : i32
    %c0_i32_0 = arith.constant 0 : i32
    return %arg0, %c0_i32 : i32, i32
  }
}

</mosaic_0001>

<bundles_post_ra>
// kernel: tpu_custom_call.1
= control target key start
LH: loop header
LB: loop body
LE: loop exit
PB: predicated region body
PF: predicated region fallthrough
CT: control target
= control target key end

     0   :  { %8 = vsyncpa [#allocation3], 0  ;;  %s964_s0 = inlined_call_operand.hbm [shape: f32[8,784], index: 0, kind: input, shape index: {}]   ;;  %s965_s1 = inlined_call_operand.hbm [shape: bf16[784,128], index: 1, kind: input, shape index: {}]   ;;  %s966_s2 = inlined_call_operand.vmem [shape: f32[1,128], index: 2, kind: input, shape index: {}]   ;;  %s967_s3 = inlined_call_operand.hbm [shape: f32[8,10], index: 3, kind: output, shape index: {}]  }
   0x1   :  { %9 = vsyncpa [#allocation6], 0 }
   0x2   :  { %10 = vsyncpa [#allocation4], 0  ;;  %s16_s14 = sshll.u32 %s964_s0, 4  ;;  %s927_s15 = smov [#allocation2]   ;;  %s17_s14 = int_to_ptr.hbm [resolvable:$true] %s16_s14 }
   0x3   :  { %s18_s16 = sshll.u32 %s927_s15, 4  ;;  %s26_s19 = sshll.u32 %s965_s1, 4  ;;  %s19_s16 = int_to_ptr.vmem [resolvable:$true] %s18_s16  ;;  %s27_s19 = int_to_ptr.hbm [resolvable:$true] %s26_s19 }
   0x4   :  { %21 = dma.hbm_to_vmem [thread:$0]  %s17_s14, 896, %s19_s16, [#allocation3]  }
   0x5   :  { %s928_s20 = smov [#allocation5]   ;;  %s929_s22 = smov 64  }
   0x6   :  { %s28_s21 = sshll.u32 %s928_s20, 4  ;;  %s930_s23 = smov 4   ;;  %s29_s21 = int_to_ptr.vmem [resolvable:$true] %s28_s21 }
   0x7   :  { %34 = dma.hbm_to_vmem [thread:$0]  %s27_s19, 6272, %s29_s21, [#allocation6], %s929_s22, %s929_s22, %s930_s23  }
   0x8   :  { %921 = dma.done.wait [#allocation3], 896  }
   0x9   :  { %922 = vsyncadd [#allocation3], 4294966400 }
   0xa   :  { %923 = dma.done.wait [#allocation6], 6272  }
   0xb   :  { %924 = vsyncadd [#allocation6], 4294961024  ;;  %v797_v0 = vld [vmem:[#allocation5 + $0x38] sm:$0xff]  ;;  %v796_v3 = vld [vmem:[#allocation5 + $0x30] sm:$0xff]  ;;  %vm456_vm0 = vcmask 130048   ;;  %s582_s27 = sshll.u32 %s967_s3, 4  ;;  %s583_s27 = int_to_ptr.hbm [resolvable:$true] %s582_s27 }
   0xc   :  { %v805_v1 = vld [vmem:[#allocation5 + $0x78] sm:$0xff]  ;;  %460 = vmatpush.bf16.msra.mxu0 %v797_v0  ;;  %v804_v4 = vld [vmem:[#allocation5 + $0x70] sm:$0xff]  ;;  %v795_v8 = vld [vmem:[#allocation5 + $0x28] sm:$0xff]  ;;  %vm573_vm5 = vcmask 80896  }
   0xd   :  { %v813_v2 = vld [vmem:[#allocation5 + $0xb8] sm:$0xff]  ;;  %473 = vmatpush.bf16.msra.mxu1 %v805_v1  ;;  %v812_v5 = vld [vmem:[#allocation5 + $0xb0] sm:$0xff]  ;;  %v803_v9 = vld [vmem:[#allocation5 + $0x68] sm:$0xff] }
   0xe   :  { %486 = vmatpush.bf16.msra.mxu2 %v813_v2  ;;  %v821_v6 = vld [vmem:[#allocation5 + $0xf8] sm:$0xff]  ;;  %v820_v7 = vld [vmem:[#allocation5 + $0xf0] sm:$0xff]  ;;  %v811_v10 = vld [vmem:[#allocation5 + $0xa8] sm:$0xff] }
   0xf   :  { %499 = vmatpush.bf16.msra.mxu3 %v821_v6  ;;  %v819_v11 = vld [vmem:[#allocation5 + $0xe8] sm:$0xff]  ;;  %v794_v12 = vld [vmem:[#allocation5 + $0x20] sm:$0xff]  ;;  %v793_v16 = vld [vmem:[#allocation5 + $0x18] sm:$0xff] }
  0x10   :  { %461 = vmatpush.bf16.msra.mxu0 %v796_v3  ;;  %v802_v13 = vld [vmem:[#allocation5 + $0x60] sm:$0xff]  ;;  %v801_v17 = vld [vmem:[#allocation5 + $0x58] sm:$0xff]  ;;  %v792_v20 = vld [vmem:[#allocation5 + $0x10] sm:$0xff] }
  0x11   :  { %474 = vmatpush.bf16.msra.mxu1 %v804_v4  ;;  %v810_v14 = vld [vmem:[#allocation5 + $0xa0] sm:$0xff]  ;;  %v809_v18 = vld [vmem:[#allocation5 + $0x98] sm:$0xff]  ;;  %v800_v21 = vld [vmem:[#allocation5 + $0x50] sm:$0xff] }
  0x12   :  { %487 = vmatpush.bf16.msra.mxu2 %v812_v5  ;;  %v818_v15 = vld [vmem:[#allocation5 + $0xe0] sm:$0xff]  ;;  %v817_v19 = vld [vmem:[#allocation5 + $0xd8] sm:$0xff]  ;;  %v808_v22 = vld [vmem:[#allocation5 + $0x90] sm:$0xff] }
  0x13   :  { %500 = vmatpush.bf16.msra.mxu3 %v820_v7  ;;  %v816_v23 = vld [vmem:[#allocation5 + $0xd0] sm:$0xff]  ;;  %v791_v24 = vld [vmem:[#allocation5 + $0x8] sm:$0xff]  ;;  %v790_v27 = vld [vmem:[#allocation5] sm:$0xff] }
  0x14   :  { %462 = vmatpush.bf16.msra.mxu0 %v795_v8  ;;  %v799_v25 = vld [vmem:[#allocation5 + $0x48] sm:$0xff]  ;;  %v798_v29 = vld [vmem:[#allocation5 + $0x40] sm:$0xff]  ;;  %v47_v31 = vld [vmem:[#allocation2 + $0x8] sm:$0xff] }
  0x15   :  { %475 = vmatpush.bf16.msra.mxu1 %v803_v9  ;;  %v807_v26 = vld [vmem:[#allocation5 + $0x88] sm:$0xff]  ;;  %v829_v32 = vld [vmem:[#allocation5 + $0x138] sm:$0xff]  ;;  %v806_v34 = vld [vmem:[#allocation5 + $0x80] sm:$0xff]  ;;  %v54_v37 = vpack.c.bf16 %v47_v31, %v47_v31 }
  0x16   :  { %488 = vmatpush.bf16.msra.mxu2 %v811_v10  ;;  %v815_v28 = vld [vmem:[#allocation5 + $0xc8] sm:$0xff]  ;;  %v837_v33 = vld [vmem:[#allocation5 + $0x178] sm:$0xff]  ;;  %v814_v38 = vld [vmem:[#allocation5 + $0xc0] sm:$0xff] }
  0x17   :  { %501 = vmatpush.bf16.msra.mxu3 %v819_v11  ;;  %v46_v30 = vld [vmem:[#allocation2] sm:$0xff]  ;;  %v48_v35 = vld [vmem:[#allocation2 + $0x10] sm:$0xff]  ;;  %v838_v39 = vld [vmem:[#allocation5 + $0x180] sm:$0xff] }
  0x18   :  { %463 = vmatpush.bf16.msra.mxu0 %v794_v12  ;;  %v53_v36 = vpack.c.bf16 %v46_v30, %v46_v30  ;;  %v49_v40 = vld [vmem:[#allocation2 + $0x18] sm:$0xff]  ;;  %v828_v41 = vld [vmem:[#allocation5 + $0x130] sm:$0xff]  ;;  %v55_v43 = vpack.c.bf16 %v48_v35, %v48_v35  ;;  %v827_v45 = vld [vmem:[#allocation5 + $0x128] sm:$0xff] }
  0x19   :  { %476 = vmatpush.bf16.msra.mxu1 %v802_v13  ;;  %v836_v42 = vld [vmem:[#allocation5 + $0x170] sm:$0xff]  ;;  %v56_v44 = vpack.c.bf16 %v49_v40, %v49_v40  ;;  %v835_v46 = vld [vmem:[#allocation5 + $0x168] sm:$0xff]  ;;  %v826_v47 = vld [vmem:[#allocation5 + $0x120] sm:$0xff] }
  0x1a   :  { %489 = vmatpush.bf16.msra.mxu2 %v810_v14  ;;  %v834_v48 = vld [vmem:[#allocation5 + $0x160] sm:$0xff]  ;;  %v825_v49 = vld [vmem:[#allocation5 + $0x118] sm:$0xff]  ;;  %v824_v52 = vld [vmem:[#allocation5 + $0x110] sm:$0xff] }
  0x1b   :  { %502 = vmatpush.bf16.msra.mxu3 %v818_v15  ;;  %v833_v50 = vld [vmem:[#allocation5 + $0x158] sm:$0xff]  ;;  %v832_v53 = vld [vmem:[#allocation5 + $0x150] sm:$0xff]  ;;  %v823_v55 = vld [vmem:[#allocation5 + $0x108] sm:$0xff] }
  0x1c   :  { %464 = vmatpush.bf16.msra.mxu0 %v793_v16  ;;  %v52_v51 = vld [vmem:[#allocation2 + $0x30] sm:$0xff]  ;;  %v831_v56 = vld [vmem:[#allocation5 + $0x148] sm:$0xff]  ;;  %v822_v57 = vld [vmem:[#allocation5 + $0x100] sm:$0xff] }
  0x1d   :  { %477 = vmatpush.bf16.msra.mxu1 %v801_v17  ;;  %v59_v54 = vpack.c.bf16 %v52_v51, %v52_v51  ;;  %v830_v58 = vld [vmem:[#allocation5 + $0x140] sm:$0xff]  ;;  %v50_v59 = vld [vmem:[#allocation2 + $0x20] sm:$0xff]  ;;  %v51_v60 = vld [vmem:[#allocation2 + $0x28] sm:$0xff] }
  0x1e   :  { %490 = vmatpush.bf16.msra.mxu2 %v809_v18  ;;  %v57_v61 = vpack.c.bf16 %v50_v59, %v50_v59  ;;  %v58_v62 = vpack.c.bf16 %v51_v60, %v51_v60  ;;  %v844_v5 = vld [vmem:[%s966_s2] ss:$0 sm:$0xff]  ;;  %s931_s2 = smov [#allocation7]  }
  0x1f   :  { %503 = vmatpush.bf16.msra.mxu3 %v817_v19  ;;  %s580_s24 = sshll.u32 %s931_s2, 4  ;;  %s581_s24 = int_to_ptr.vmem [resolvable:$true] %s580_s24 }
  0x20   :  { %465 = vmatpush.bf16.msra.mxu0 %v792_v20 }
  0x21   :  { %478 = vmatpush.bf16.msra.mxu1 %v800_v21 }
  0x22   :  { %491 = vmatpush.bf16.msra.mxu2 %v808_v22 }
  0x23   :  { %504 = vmatpush.bf16.msra.mxu3 %v816_v23 }
  0x24   :  { %466 = vmatpush.bf16.msra.mxu0 %v791_v24 }
  0x25   :  { %479 = vmatpush.bf16.msra.mxu1 %v799_v25 }
  0x26   :  { %492 = vmatpush.bf16.msra.mxu2 %v807_v26 }
  0x27   :  { %505 = vmatpush.bf16.msra.mxu3 %v815_v28 }
  0x28   :  { %467 = vmatpush.bf16.msra.mxu0 %v790_v27 }
  0x29   :  { %480 = vmatpush.bf16.msra.mxu1 %v798_v29 }
  0x2a   :  { %493 = vmatpush.bf16.msra.mxu2 %v806_v34 }
  0x2b   :  { %468 = vmatmul.bf16.vlgmr.msra.gmra.mxu0 %v53_v36  ;;  %506 = vmatpush.bf16.msra.mxu3 %v814_v38 }
  0x2c   :  { %512 = vmatpush.bf16.msrb.mxu0 %v829_v32  ;;  %481 = vmatmul.bf16.vlgmr.msra.gmra.mxu1 %v54_v37 }
  0x2d   :  { %525 = vmatpush.bf16.msrb.mxu1 %v837_v33  ;;  %494 = vmatmul.bf16.vlgmr.msra.gmra.mxu2 %v55_v43 }
  0x2e   :  { %545 = vmatpush.bf16.msrb.mxu2 %v838_v39  ;;  %507 = vmatmul.bf16.vlgmr.msra.gmra.mxu3 %v56_v44 }
  0x30   :  { %513 = vmatpush.bf16.msrb.mxu0 %v828_v41 }
  0x31   :  { %526 = vmatpush.bf16.msrb.mxu1 %v836_v42 }
  0x34   :  { %514 = vmatpush.bf16.msrb.mxu0 %v827_v45 }
  0x35   :  { %527 = vmatpush.bf16.msrb.mxu1 %v835_v46 }
  0x38   :  { %515 = vmatpush.bf16.msrb.mxu0 %v826_v47 }
  0x39   :  { %528 = vmatpush.bf16.msrb.mxu1 %v834_v48 }
  0x3c   :  { %516 = vmatpush.bf16.msrb.mxu0 %v825_v49 }
  0x3d   :  { %529 = vmatpush.bf16.msrb.mxu1 %v833_v50  ;;  %789 = vmatmul.msk.bf16.vlgmr.msrb.gmra.mxu2 %vm456_vm0, %v59_v54 }
  0x40   :  { %517 = vmatpush.bf16.msrb.mxu0 %v824_v52 }
  0x41   :  { %530 = vmatpush.bf16.msrb.mxu1 %v832_v53 }
  0x44   :  { %518 = vmatpush.bf16.msrb.mxu0 %v823_v55 }
  0x45   :  { %531 = vmatpush.bf16.msrb.mxu1 %v831_v56 }
  0x48   :  { %519 = vmatpush.bf16.msrb.mxu0 %v822_v57 }
  0x49   :  { %532 = vmatpush.bf16.msrb.mxu1 %v830_v58 }
  0x4b   :  { %520 = vmatmul.bf16.vlgmr.msrb.gmra.mxu0 %v57_v61 }
  0x4c   :  { %533 = vmatmul.bf16.vlgmr.msrb.gmra.mxu1 %v58_v62 }
  0xa8   :  { %v469_v63 = vpop.f32.mrf.mxu0 }
  0xa9   :  { %v482_v0 = vpop.f32.mrf.mxu1  ;;  %v470_v6 = vadd.f32 %v844_v5, %v469_v63 }
  0xab   :  { %v483_v9 = vadd.f32 %v482_v0, %v470_v6 }
  0xb0   :  { %v471_v1 = vpop.f32.mrf.mxu0  ;;  %v495_v3 = vpop.f32.mrf.mxu2 }
  0xb1   :  { %v484_v2 = vpop.f32.mrf.mxu1  ;;  %v508_v4 = vpop.f32.mrf.mxu3  ;;  %v496_v10 = vadd.f32 %v495_v3, %v483_v9 }
  0xb3   :  { %v509_v12 = vadd.f32 %v508_v4, %v496_v10 }
  0xb8   :  { %v497_v7 = vpop.f32.mrf.mxu2 }
  0xb9   :  { %v510_v8 = vpop.f32.mrf.mxu3 }
  0xc0   :  { %v547_v11 = vpop.f32.mrf.mxu2 }
  0xc8   :  { %v521_v13 = vpop.f32.mrf.mxu0  ;;  %v549_v17 = vpop.f32.mrf.mxu2 }
  0xc9   :  { %v534_v14 = vpop.f32.mrf.mxu1  ;;  %v522_v15 = vadd.f32 %v521_v13, %v509_v12 }
  0xcb   :  { %v535_v16 = vadd.f32 %v534_v14, %v522_v15 }
  0xcd   :  { %v548_v18 = vadd.f32 %v547_v11, %v535_v16 }
  0xcf   :  { %551 = vmax.xlane.f32.xlu0 %v548_v18 }
  0xd0   :  { %v523_v19 = vpop.f32.mrf.mxu0 }
  0xd1   :  { %v536_v20 = vpop.f32.mrf.mxu1 }
 0x142   :  { %v552_v21 = vpop.xlane.xlu0 %551 }
 0x143   :  { %v553_v22 = vsub.f32 %v548_v18, %v552_v21 }
 0x145   :  { %v554_v23 = vmul.f32 1.442695, %v553_v22 }
 0x147   :  { %845 = vpow2.f32 %v554_v23 }
 0x14d   :  { %v846_v24 = vpop.eup %845 }
 0x14e   :  { %556 = vadd.xlane.f32.xlu0 %v846_v24 }
 0x1c1   :  { %v557_v25 = vpop.xlane.xlu0 %556 }
 0x1c2   :  { %847 = vrcp.f32 %v557_v25  ;;  %v569_v29 = vand.u32 2147483648, %v557_v25  ;;  %v567_v31 = vand.u32 2147483647, %v557_v25  ;;  %vm563_vm2 = vweird.f32 %v557_v25 }
 0x1c4   :  { %v570_v33 = vor.u32 1.1754944e-38, %v569_v29  ;;  %vm568_vm4 = vcmp.eq.f32.partialorder %v567_v31, 8.507059e+37 }
 0x1c8   :  { %v848_v26 = vpop.eup %847 }
 0x1c9   :  { %v559_v27 = vmul.f32 %v848_v26, %v557_v25  ;;  %vm564_vm1 = vweird.f32 %v848_v26 }
 0x1ca   :  { %vm565_vm3 = vmor %vm563_vm2, %vm564_vm1 }
 0x1cb   :  { %v560_v28 = vsub.f32 1.0, %v559_v27 }
 0x1cd   :  { %v561_v30 = vmul.f32 %v848_v26, %v560_v28 }
 0x1cf   :  { %v562_v32 = vadd.f32 %v848_v26, %v561_v30 }
 0x1d1   :  { %v566_v34 = vsel %vm565_vm3, %v848_v26, %v562_v32 }
 0x1d2   :  { %v571_v35 = vsel %vm568_vm4, %v570_v33, %v566_v34 }
 0x1d3   :  { %v572_v36 = vmul.f32 %v846_v24, %v571_v35 }
 0x1d5   :  { %574 = vst.msk [vmem:[#allocation7] sm:$0xff] %vm573_vm5, %v572_v36 }
 0x1d6   :  { %585 = dma.vmem_to_hbm [thread:$0]  %s581_s24, 128, %s583_s27, [#allocation4]  }
 0x1d7   :  { %925 = dma.done.wait [#allocation4], 128  }
 0x1d8   :  { %926 = vsyncadd [#allocation4], 4294967168 }
 0x1d9   :  { %590 = vsyncpa [#allocation3], 1 }
 0x1da   :  { %591 = vsyncpa [#allocation6], 1 }
 0x1db   :  { %592 = vsyncpa [#allocation4], 1 }

</bundles_post_ra>
